<compile_context>
chip_gen: v5e
topology: v5e:2x2
jax: 0.10.0
libtpu: 0.0.40
codegen_flags: <defaults>
</compile_context>

<pallas_src>
import functools

import jax
import jax.numpy as jnp
from jax.experimental import pallas as pl
from jax.experimental.pallas import tpu as pltpu

_MIB = 1024 * 1024


# -----------------------------------------------------------------------------
# Generation-aware VMEM budget (v5e/v6e: 128 MiB physical, v7x: 64 MiB).
# -----------------------------------------------------------------------------
def _vmem_capacity_bytes():
    try:
        info = pltpu.get_tpu_info()
        for attr in ("vmem_capacity_bytes", "vmem_size_bytes", "vmem_bytes"):
            v = getattr(info, attr, None)
            if v:
                return int(v)
    except Exception:
        pass
    return 64 * _MIB  # v7x floor -- safe everywhere


def _vmem_budget():
    total = _vmem_capacity_bytes()
    limit = int(min(total * 3 // 4, 96 * _MIB))          # scoped-VMEM limit to request
    per_block = int(max(512 * 1024, min(8 * _MIB, limit // 6)))  # ONE x block budget
    return per_block, limit


def _pick_spatial_tile(hw, c, per_block_budget):
    """Largest lane tile (multiple of 128, within budget).  Full extent if hw < 128.
    Tail tiles are handled by the cdiv grid (no divisor requirement)."""
    if hw < 128:
        return hw
    cap = max(128, (per_block_budget // (4 * c)) // 128 * 128)
    return int(min(cap, (hw // 128) * 128))


# -----------------------------------------------------------------------------
# Kernel 1 (inference): fused 1x1 conv (matmul) + bias + sigmoid, lane-dense out.
#   x_ref: (1, C, TS)            VMEM
#   w_ref: (num_class, C)        VMEM (resident)
#   b_ref: (num_class, 1)        VMEM (resident bias column)
#   o_ref: (1, num_class, TS)    VMEM (lane-dense; tail writeback masked by Pallas)
# -----------------------------------------------------------------------------
def _conv1x1_sigmoid_kernel(x_ref, w_ref, b_ref, o_ref):
    y = jnp.dot(w_ref[...], x_ref[0], preferred_element_type=jnp.float32)  # (nc, TS)
    o_ref[0] = jax.nn.sigmoid(y + b_ref[...]).astype(o_ref.dtype)          # one store


# -----------------------------------------------------------------------------
# Kernel 2 (training): fused conv + sigmoid + masked squared-error, per-batch sum.
#   x_ref: (1, C, TS)   w_ref: (1, C)   b_ref: (1, 1)   t_ref: (1, 2, TS)
#   o_ref: (1, 1)  per-batch partial loss (written once, at the last spatial step)
#   acc_ref: (1, TS) f32 VMEM scratch, elementwise-accumulated per step.
# -----------------------------------------------------------------------------
def _fused_loss_kernel(x_ref, w_ref, b_ref, t_ref, o_ref, acc_ref, *, ts, hw):
    s = pl.program_id(1)

    @pl.when(s == 0)
    def _init():
        acc_ref[...] = jnp.zeros_like(acc_ref)

    p = jax.nn.sigmoid(
        jnp.dot(w_ref[...], x_ref[0], preferred_element_type=jnp.float32)
        + b_ref[...])                                        # (1, TS)
    d = p - t_ref[0, 0:1, :]
    contrib = d * d * t_ref[0, 1:2, :]

    if hw % ts != 0:  # static: emit tail masking only when a partial tile exists
        lane = jax.lax.broadcasted_iota(jnp.int32, contrib.shape, 1)
        contrib = jnp.where(s * ts + lane < hw, contrib, 0.0)

    acc_ref[...] += contrib                                  # pure VPU, no XLU per step

    @pl.when(s == pl.num_programs(1) - 1)
    def _finalize():
        o_ref[...] = jnp.sum(acc_ref[...], axis=1, keepdims=True)


# -----------------------------------------------------------------------------
# HeatMapHead forward (matches the PyTorch module semantics)
# -----------------------------------------------------------------------------
def heatmap_head_forward(x_nchw, w_conv, b_conv, target_mask=None):
    """
    x_nchw:      (N, C, H, W) float32
    w_conv:      (num_class, C, 1, 1) float32   (PyTorch Conv2d weight layout)
    b_conv:      (num_class,) float32
    target_mask: optional (N, 2, H, W) float32  -> returns scalar masked MSE-sum
    """
    N, C, H, W = x_nchw.shape
    num_class = w_conv.shape[0]
    HW = H * W

    x = x_nchw.reshape(N, C, HW).astype(jnp.float32)          # free reshape
    w = w_conv.reshape(num_class, C).astype(jnp.float32)
    b_col = b_conv.reshape(num_class, 1).astype(jnp.float32)

    per_block, vmem_limit = _vmem_budget()
    ts = _pick_spatial_tile(HW, C, per_block)

    if target_mask is None:
        # Give megacore (v7x: 2 TCs) at least 2 parallel steps for single-image runs.
        if N == 1 and pl.cdiv(HW, ts) < 2 and HW > 128:
            ts = min(ts, ((HW // 2 + 127) // 128) * 128)
        grid = (N, pl.cdiv(HW, ts))
        preds_flat = pl.pallas_call(
            _conv1x1_sigmoid_kernel,
            out_shape=jax.ShapeDtypeStruct((N, num_class, HW), jnp.float32),
            grid_spec=pltpu.PrefetchScalarGridSpec(
                num_scalar_prefetch=0,
                grid=grid,
                in_specs=[
                    pl.BlockSpec((1, C, ts), lambda n, s: (n, 0, s)),          # x
                    pl.BlockSpec((num_class, C), lambda n, s: (0, 0)),         # w
                    pl.BlockSpec((num_class, 1), lambda n, s: (0, 0)),         # bias col
                ],
                out_specs=pl.BlockSpec((1, num_class, ts),
                                       lambda n, s: (n, 0, s)),
            ),
            compiler_params=pltpu.CompilerParams(
                dimension_semantics=("parallel", "parallel"),
                vmem_limit_bytes=vmem_limit),
        )(x, w, b_col)
        return preds_flat.reshape(N, num_class, H, W)

    # Training path: fused conv + sigmoid + masked MSE-sum, (N,1) partials so the
    # batch axis stays "parallel"; tiny XLA sum in the wrapper.
    grid = (N, pl.cdiv(HW, ts))
    t = target_mask.reshape(N, 2, HW).astype(jnp.float32)      # free reshape
    w0 = w[0:1, :]                                             # only class 0 used
    b0 = b_col[0:1, :]
    kernel = functools.partial(_fused_loss_kernel, ts=ts, hw=HW)
    partial_losses = pl.pallas_call(
        kernel,
        out_shape=jax.ShapeDtypeStruct((N, 1), jnp.float32),
        grid_spec=pltpu.PrefetchScalarGridSpec(
            num_scalar_prefetch=0,
            grid=grid,
            in_specs=[
                pl.BlockSpec((1, C, ts), lambda n, s: (n, 0, s)),              # x
                pl.BlockSpec((1, C), lambda n, s: (0, 0)),                     # w row 0
                pl.BlockSpec((1, 1), lambda n, s: (0, 0)),                     # bias 0
                pl.BlockSpec((1, 2, ts), lambda n, s: (n, 0, s)),              # target
            ],
            out_specs=pl.BlockSpec((1, 1), lambda n, s: (n, 0)),
            scratch_shapes=[pltpu.VMEM((1, ts), jnp.float32)],
        ),
        compiler_params=pltpu.CompilerParams(
            dimension_semantics=("parallel", "arbitrary"),
            vmem_limit_bytes=vmem_limit),
    )(x, w0, b0, t)
    return jnp.sum(partial_losses)


# -----------------------------------------------------------------------------
if __name__ == "__main__":
    key = jax.random.PRNGKey(0)
    k1, k2, k3, k4, k5, k6, k7, k8 = jax.random.split(key, 8)

    # --- Test 1: module defaults (num_class=1, in_channel=64), 16x16 map -------
    N, C, H, W = 2, 64, 16, 16
    num_class = 1
    x = jax.random.normal(k1, (N, C, H, W), dtype=jnp.float32)
    bound = 1.0 / (C ** 0.5)
    w_conv = jax.random.uniform(k2, (num_class, C, 1, 1), jnp.float32, -bound, bound)
    b_conv = jax.random.uniform(k3, (num_class,), jnp.float32, -bound, bound)
    target_mask = jax.random.uniform(k4, (N, 2, H, W), dtype=jnp.float32)

    preds = heatmap_head_forward(x, w_conv, b_conv)
    loss = heatmap_head_forward(x, w_conv, b_conv, target_mask)
    jax.block_until_ready((preds, loss))

    w_mat = w_conv.reshape(num_class, C)
    preds_ref = jax.nn.sigmoid(
        jnp.einsum("nchw,oc->nohw", x, w_mat) + b_conv.reshape(1, num_class, 1, 1))
    loss_ref = jnp.sum(
        (preds_ref[:, 0] - target_mask[:, 0]) ** 2 * target_mask[:, 1])
    assert preds.shape == (N, num_class, H, W)
    assert jnp.allclose(preds, preds_ref, atol=1e-5, rtol=1e-5)
    assert jnp.allclose(loss, loss_ref, atol=1e-3, rtol=1e-5)

    # --- Test 2: multi-class inference (vectorized epilogue, no per-class loop) -
    nc3 = 3
    w3 = jax.random.uniform(k5, (nc3, C, 1, 1), jnp.float32, -bound, bound)
    b3 = jax.random.uniform(k6, (nc3,), jnp.float32, -bound, bound)
    preds3 = heatmap_head_forward(x, w3, b3)
    preds3_ref = jax.nn.sigmoid(
        jnp.einsum("nchw,oc->nohw", x, w3.reshape(nc3, C)) + b3.reshape(1, nc3, 1, 1))
    assert jnp.allclose(preds3, preds3_ref, atol=1e-5, rtol=1e-5)

    # --- Test 3: HW not a multiple of 128 (tail tile + in-kernel masking) -------
    Ht, Wt = 13, 13                                    # HW = 169 -> ts=128, 2 tiles
    xt = jax.random.normal(k7, (1, C, Ht, Wt), dtype=jnp.float32)
    tmt = jax.random.uniform(k8, (1, 2, Ht, Wt), dtype=jnp.float32)
    preds_t = heatmap_head_forward(xt, w_conv, b_conv)
    loss_t = heatmap_head_forward(xt, w_conv, b_conv, tmt)
    preds_t_ref = jax.nn.sigmoid(
        jnp.einsum("nchw,oc->nohw", xt, w_mat) + b_conv.reshape(1, num_class, 1, 1))
    loss_t_ref = jnp.sum((preds_t_ref[:, 0] - tmt[:, 0]) ** 2 * tmt[:, 1])
    assert jnp.allclose(preds_t, preds_t_ref, atol=1e-5, rtol=1e-5)
    assert jnp.allclose(loss_t, loss_t_ref, atol=1e-3, rtol=1e-5)

    # --- Test 4: N==1 single-tile map (forced spatial split for megacore) -------
    x1 = x[:1]
    preds1 = heatmap_head_forward(x1, w_conv, b_conv)
    assert jnp.allclose(preds1, preds_ref[:1], atol=1e-5, rtol=1e-5)

    jax.block_until_ready((preds3, preds_t, loss_t, preds1))
    print("KERNEL_OK")
</pallas_src>

<mosaic_0001>
module attributes {stable_mosaic.version = 11 : i64} {
  func.func @_conv1x1_sigmoid_kernel(%arg0: i32, %arg1: i32, %arg2: memref<1x64x256xf32, #tpu.memory_space<vmem>>, %arg3: memref<1x64xf32, #tpu.memory_space<vmem>>, %arg4: memref<1x1xf32, #tpu.memory_space<vmem>>, %arg5: memref<1x1x256xf32, #tpu.memory_space<vmem>>) attributes {dimension_semantics = [#tpu.dimension_semantics<parallel>, #tpu.dimension_semantics<parallel>], iteration_bounds = array<i64: 2, 1>, scalar_prefetch = 0 : i64, scratch_operands = 0 : i64, tpu.core_type = #tpu.core_type<tc>, window_params = [{transform_indices = @transform_0, window_bounds = array<i64: 1, 64, 256>}, {pipeline_mode = #tpu.pipeline_mode<synchronous>, transform_indices = @transform_1, window_bounds = array<i64: 1, 64>}, {pipeline_mode = #tpu.pipeline_mode<synchronous>, transform_indices = @transform_2, window_bounds = array<i64: 1, 1>}, {transform_indices = @transform_3, window_bounds = array<i64: 1, 1, 256>}]} {
    %c0 = arith.constant 0 : index
    %c0_0 = arith.constant 0 : index
    %0 = vector.load %arg3[%c0, %c0_0] : memref<1x64xf32, #tpu.memory_space<vmem>>, vector<1x64xf32>
    %c0_1 = arith.constant 0 : index
    %c0_2 = arith.constant 0 : index
    %c0_3 = arith.constant 0 : index
    %1 = vector.load %arg2[%c0_1, %c0_2, %c0_3] : memref<1x64x256xf32, #tpu.memory_space<vmem>>, vector<1x64x256xf32>
    %2 = vector.shape_cast %1 : vector<1x64x256xf32> to vector<64x256xf32>
    %cst = arith.constant dense<0.000000e+00> : vector<1x256xf32>
    %3 = tpu.matmul %0, %2, %cst {dimension_numbers = #tpu.dot_dimension_numbers<[1], [0], [0], [1], [0, 0, 1, 1], [], []>} : vector<1x64xf32>, vector<64x256xf32>, vector<1x256xf32> -> vector<1x256xf32>
    %c0_4 = arith.constant 0 : index
    %c0_5 = arith.constant 0 : index
    %4 = vector.load %arg4[%c0_4, %c0_5] : memref<1x1xf32, #tpu.memory_space<vmem>>, vector<1x1xf32>
    %5 = vector.broadcast %4 : vector<1x1xf32> to vector<1x256xf32>
    %6 = arith.addf %3, %5 : vector<1x256xf32>
    %7 = arith.negf %6 : vector<1x256xf32>
    %8 = math.exp %7 : vector<1x256xf32>
    %cst_6 = arith.constant 1.000000e+00 : f32
    %9 = vector.broadcast %cst_6 : f32 to vector<1x256xf32>
    %10 = arith.addf %9, %8 : vector<1x256xf32>
    %11 = arith.divf %9, %10 : vector<1x256xf32>
    %c0_7 = arith.constant 0 : index
    %c0_8 = arith.constant 0 : index
    %c0_9 = arith.constant 0 : index
    %12 = vector.load %arg5[%c0_7, %c0_8, %c0_9] : memref<1x1x256xf32, #tpu.memory_space<vmem>>, vector<1x1x256xf32>
    %13 = vector.shape_cast %12 : vector<1x1x256xf32> to vector<1x256xf32>
    %14 = vector.shape_cast %11 : vector<1x256xf32> to vector<1x1x256xf32>
    tpu.vector_store %arg5[%c0_7, %c0_8, %c0_9], %14 {strides = array<i32>} : memref<1x1x256xf32, #tpu.memory_space<vmem>>, vector<1x1x256xf32>,
    return
  }
  func.func @transform_0(%arg0: i32, %arg1: i32) -> (i32, i32, i32) {
    %c0_i32 = arith.constant 0 : i32
    %c0_i32_0 = arith.constant 0 : i32
    return %arg0, %c0_i32, %arg1 : i32, i32, i32
  }
  func.func @transform_1(%arg0: i32, %arg1: i32) -> (i32, i32) {
    %c0_i32 = arith.constant 0 : i32
    %c0_i32_0 = arith.constant 0 : i32
    %c0_i32_1 = arith.constant 0 : i32
    return %c0_i32, %c0_i32_0 : i32, i32
  }
  func.func @transform_2(%arg0: i32, %arg1: i32) -> (i32, i32) {
    %c0_i32 = arith.constant 0 : i32
    %c0_i32_0 = arith.constant 0 : i32
    %c0_i32_1 = arith.constant 0 : i32
    return %c0_i32, %c0_i32_0 : i32, i32
  }
  func.func @transform_3(%arg0: i32, %arg1: i32) -> (i32, i32, i32) {
    %c0_i32 = arith.constant 0 : i32
    %c0_i32_0 = arith.constant 0 : i32
    return %arg0, %c0_i32, %arg1 : i32, i32, i32
  }
}

</mosaic_0001>

<bundles_post_ra>
// kernel: tpu_custom_call.1
= control target key start
LH: loop header
LB: loop body
LE: loop exit
PB: predicated region body
PF: predicated region fallthrough
CT: control target
= control target key end

     0   :  { %s812_s0 = inlined_call_operand.hbm [shape: f32[2,64,256], index: 0, kind: input, shape index: {}]   ;;  %s813_s1 = inlined_call_operand.vmem [shape: f32[1,64], index: 1, kind: input, shape index: {}]   ;;  %s814_s2 = inlined_call_operand.<no memory space> [shape: f32[1,1], index: 2, kind: input, shape index: {}]   ;;  %s815_s3 = inlined_call_operand.hbm [shape: f32[2,1,256], index: 3, kind: output, shape index: {}]  }
   0x1   :  { %v8_v0 = vstv %s814_s2 }
   0x2   :  { %9 = vst [vmem:[#allocation2] sm:$0x1] %v8_v0 }
   0x3   :  { %10 = vsyncpa [#allocation4], 0 }
   0x4   :  { %12 = vsyncpa [#allocation4 + $0x1], 0 }
   0x5   :  { %13 = vsyncpa [#allocation5], 0 }
   0x6   :  { %15 = vsyncpa [#allocation5 + $0x1], 0  ;;  %s664_s14 = smov 0   ;;  %s666_s15 = smov 0  }
   0x7   :  { %s668_s16 = smov 0   ;;  %s670_s17 = smov 0  }
   0x8   :  { %s672_s18 = smov 0   ;;  %s674_s19 = smov 0  }
   0x9 LB: > { %s431_s2 = sadd.s32 4294967295, %s636_s19   ;;  %s432_s20 = sadd.s32 4294967294, %s636_s19   ;;  %s636_s19 = sphi %s674_s19, %s21_s19   ;;  %s632_s18 = sphi %s672_s18, %s826_s18   ;;  %s628_s17 = sphi %s670_s17, %s825_s17   ;;  %s624_s16 = sphi %s668_s16, %s824_s16   ;;  %s620_s15 = sphi %s666_s15, %s823_s15   ;;  %s616_s14 = sphi %s664_s14, %s822_s14  }
   0xa   : > { %s33_s21 = sadd.s32 1, %s632_s18  ;;  %s42_s22 = sadd.s32 1, %s624_s16 }
   0xb   : > { %p35_p0 = scmp.ge.s32.totalorder %s33_s21, 2  ;;  %p49_p1 = scmp.ne.s32.totalorder %s624_s16, %s620_s15 }
   0xc   : > { %p50_p2 = scmp.eq.s32.totalorder %s636_s19, 0  ;;  %p55_p3 = scmp.ne.s32.totalorder %s620_s15, %s616_s14 }
   0xd   : > { %s828_s21 = smov (%p35_p0, %s33_s21), 0  ;;  %p56_p5 = scmp.eq.s32.totalorder %s431_s2, 0 }
   0xe   : > { %p705_p4 = por %p50_p2, %p49_p1  ;;  %s37_s24 = ssub.s32 %s632_s18, %s828_s21 }
   0xf   : > { %p123_p6 = scmp.eq.s32.totalorder %s431_s2, 1  ;;  %p40_p7 = scmp.eq.s32.totalorder %s37_s24, 0 }
  0x10   : > { %p711_p8 = por %p56_p5, %p55_p3  ;;  %p129_p10 = scmp.eq.s32.totalorder %s432_s20, 1 }
  0x11   : > { %p715_p9 = por %p123_p6, %p49_p1  ;;  %p434_p12 = scmp.ge.s32.totalorder %s636_s19, 2 }
  0x12   : > { %s720_s27 = scalar_select %p40_p7, %s624_s16, %s42_s22  }
  0x13   : > { %p722_p11 = por %p129_p10, %p55_p3  ;;  %p462_p13 = scmp.lt.s32.totalorder %s636_s19, 2 }
  0x14   : > { %s155_s29 = sand.u32 1, %s624_s16   ;;  %s449_s4 = sshll.u32 %s632_s18, 7 }
  0x15   : > { %s435_s30 = sshll.u32 %s155_s29, 7  ;;  %s166_s7 = scalar_lea.hbm %s812_s0, %s449_s4 }
  0x16   : > { %s159_s8 = scalar_lea.vmem [#allocation3], %s435_s30  ;;  %s167_s10 = sshll.u32 %s166_s7, 4  ;;  %s168_s10 = int_to_ptr.hbm [resolvable:$true] %s167_s10 }
  0x17   : > { %s169_s9 = sshll.u32 %s159_s8, 4  ;;  %p455_p0 = pnand %p462_p13, %p705_p4  ;;  %s170_s9 = int_to_ptr.vmem [resolvable:$true] %s169_s9 }
  0x18   : > { %p438_p1 = scmp.ge.s32.totalorder %s636_s19, 1  ;;  %s156_s11 = scalar_lea.sflag [#allocation4], %s155_s29 }
  0x19   : > { %s638_s12 = smov 256   ;;  %s639_s13 = smov 16  }
  0x1a   : > { %457 = dma.hbm_to_vmem [thread:$0]  (!%p455_p0), %s168_s10, 2048, %s170_s9, %s156_s11, %s638_s12, %s638_s12, %s639_s13  }
  0x1b   : > { %p177_p2 = scmp.lt.s32.totalorder %s636_s19, 3 }
  0x1d   : > { %p178_p3 = pnand %p438_p1, %p177_p2 }
  0x1e   : > { %s738_s2 = sand.u32 (!%p178_p3), 1, %s620_s15  }
  0x1f   : > { %181 = sbr.rel (%p178_p3) target bundleno = 216 (0xd8), region = 32  ;;  %s439_s20 = sshll.u32 (!%p178_p3), %s738_s2, 7 }
  0x20   : > { %s184_s22 = scalar_lea.sflag (!%p178_p3), [#allocation4], %s738_s2  ;;  %s742_s24 = scalar_lea.vmem (!%p178_p3), [#allocation3], %s439_s20 }
  0x24   : > { %607 = dma.done.wait (%p711_p8), %s184_s22, 2048  }
  0x25   : > { %609 = vsyncadd (%p711_p8), %s184_s22, 4294965248  ;;  %v640_v1 = vmov 0   ;;  %v228_v2 = vld [vmem:[%s742_s24 + $0x70] sm:$0xff]  ;;  %v229_v3 = vld [vmem:[%s742_s24 + $0x78] sm:$0xff]  ;;  %vm237_vm0 = vcmask 523264   ;;  %s440_s29 = sshll.u32 %s738_s2, 1  ;;  %v325_v47 = vlaneseq }
  0x26   : > { %515 = vset.pattern.permute.xlu0 %v640_v1  ;;  %v226_v4 = vld [vmem:[%s742_s24 + $0x60] sm:$0xff]  ;;  %249 = vmatpush.msra.mxu0 %v228_v2  ;;  %v227_v5 = vld [vmem:[%s742_s24 + $0x68] sm:$0xff]  ;;  %v224_v6 = vld [vmem:[%s742_s24 + $0x50] sm:$0xff]  ;;  %s446_s30 = sshll.u32 %s628_s17, 1  ;;  %s210_s17 = scalar_lea.vmem [#allocation6], %s440_s29  ;;  %vm322_vm8 = vcmask 1040384  }
  0x27   : > { %269 = vmatpush.msra.mxu1 %v229_v3  ;;  %v225_v7 = vld [vmem:[%s742_s24 + $0x58] sm:$0xff]  ;;  %v222_v8 = vld [vmem:[%s742_s24 + $0x40] sm:$0xff]  ;;  %v223_v9 = vld [vmem:[%s742_s24 + $0x48] sm:$0xff]  ;;  %s343_s6 = scalar_lea.hbm %s815_s3, %s446_s30  ;;  %s345_s7 = sshll.u32 %s210_s17, 4  ;;  %vm327_vm10 = vcmp.lt.s32.totalorder %v325_v47, 256  ;;  %s346_s7 = int_to_ptr.vmem [resolvable:$true] %s345_s7 }
  0x28   : > { %250 = vmatpush.msra.mxu0 %v226_v4  ;;  %v230_v10 = vld [vmem:[#allocation2] sm:$0x1]  ;;  %v220_v11 = vld [vmem:[%s742_s24 + $0x30] sm:$0xff]  ;;  %v218_v13 = vld [vmem:[%s742_s24 + $0x20] sm:$0xff]  ;;  %s347_s8 = sshll.u32 %s343_s6, 4  ;;  %s331_s9 = scalar_lea.sflag [#allocation5], %s738_s2  ;;  %s348_s8 = int_to_ptr.hbm [resolvable:$true] %s347_s8 }
  0x29   : > { %270 = vmatpush.msra.mxu1 %v227_v5  ;;  %v221_v12 = vld [vmem:[%s742_s24 + $0x38] sm:$0xff]  ;;  %233 = vperm.xlu0 %515, %v230_v10   ;;  %v219_v14 = vld [vmem:[%s742_s24 + $0x28] sm:$0xff]  ;;  %v216_v15 = vld [vmem:[%s742_s24 + $0x10] sm:$0xff]  ;;  %s568_s10 = sshra.s32 %s348_s8, 4  ;;  %s574_s20 = scalar_lea.hbm %s815_s3, 4  ;;  %s569_s10 = int_to_ptr.hbm [resolvable:$true] %s568_s10 }
  0x2a   : > { %251 = vmatpush.msra.mxu0 %v224_v6  ;;  %v217_v16 = vld [vmem:[%s742_s24 + $0x18] sm:$0xff]  ;;  %v214_v17 = vld [vmem:[%s742_s24] sm:$0xff]  ;;  %v215_v18 = vld [vmem:[%s742_s24 + $0x8] sm:$0xff]  ;;  %s570_s11 = scalar_lea.hbm %s569_s10, 2  ;;  %p575_p7 = scmp.lt.s32.totalorder %s569_s10, %s815_s3 }
  0x2b   : > { %271 = vmatpush.msra.mxu1 %v225_v7  ;;  %v213_v19 = vld [vmem:[%s813_s1] sm:$0x1]  ;;  %p571_p4 = scmp.ne.s32.totalorder %s569_s10, %s570_s11  ;;  %p576_p8 = scmp.lt.s32.totalorder %s574_s20, %s570_s11 }
  0x2c   : > { %252 = vmatpush.msra.mxu0 %v222_v8 }
  0x2d   : > { %272 = vmatpush.msra.mxu1 %v223_v9  ;;  %p572_p5 = pnand %p571_p4, %p715_p9  ;;  %p577_p10 = por %p576_p8, %p575_p7 }
  0x2e   : > { %253 = vmatpush.msra.mxu0 %v220_v11 }
  0x2f   : > { %273 = vmatpush.msra.mxu1 %v221_v12  ;;  %p573_p6 = pneg %p572_p5 }
  0x30   : > { %254 = vmatpush.msra.mxu0 %v218_v13 }
  0x31   : > { %274 = vmatpush.msra.mxu1 %v219_v14  ;;  %p578_p13 = pnand %p577_p10, %p573_p6 }
  0x32   : > { %255 = vmatpush.msra.mxu0 %v216_v15 }
  0x33   : > { %275 = vmatpush.msra.mxu1 %v217_v16 }
  0x34   : > { %256 = vmatpush.msra.mxu0 %v214_v17 }
  0x35   : > { %276 = vmatpush.msra.mxu1 %v215_v18  ;;  %441 = vmatmul.msk.f32.vlgmr.msra.gmra.mxu0 %vm237_vm0, %v213_v19 }
  0x36   : > { %442 = vmatmul.msk.f32.vlgmr.msra.gmra.mxu1 %vm237_vm0, %v213_v19 }
  0x9b   : > { %v234_v20 = vpop.permute.xlu0 %233 }
  0x9c   : > { %v236_v21 = vperm.slane %v234_v20, 0 }
  0xb2   : > { %v258_v22 = vpop.f32.mrf.mxu0 }
  0xb3   : > { %v278_v23 = vpop.f32.mrf.mxu1  ;;  %v259_v24 = vadd.f32 %v258_v22, %v236_v21 }
  0xb4   : > { %v279_v25 = vadd.f32 %v278_v23, %v236_v21 }
  0xb5   : > { %v443_v26 = vmul.f32 -1.442695, %v259_v24 }
  0xb6   : > { %v444_v27 = vmul.f32 -1.442695, %v279_v25 }
  0xb7   : > { %516 = vpow2.f32 %v443_v26 }
  0xb8   : > { %518 = vpow2.f32 %v444_v27 }
  0xbd   : > { %v517_v28 = vpop.eup %516 }
  0xbe   : > { %v519_v29 = vpop.eup %518  ;;  %v287_v30 = vadd.f32 1.0, %v517_v28 }
  0xbf   : > { %v288_v31 = vadd.f32 1.0, %v519_v29 }
  0xc0   : > { %520 = vrcp.f32 %v287_v30  ;;  %vm294_vm3 = vweird.f32 %v287_v30  ;;  %v300_v42 = vand.u32 2147483648, %v287_v30  ;;  %v298_v46 = vand.u32 2147483647, %v287_v30 }
  0xc1   : > { %522 = vrcp.f32 %v288_v31  ;;  %v315_v39 = vand.u32 2147483648, %v288_v31  ;;  %v313_v41 = vand.u32 2147483647, %v288_v31  ;;  %vm309_vm4 = vweird.f32 %v288_v31 }
  0xc2   : > { %v301_v51 = vor.u32 1.1754944e-38, %v300_v42  ;;  %vm299_vm9 = vcmp.eq.f32.partialorder %v298_v46, 8.507059e+37 }
  0xc3   : > { %v316_v48 = vor.u32 1.1754944e-38, %v315_v39  ;;  %vm314_vm7 = vcmp.eq.f32.partialorder %v313_v41, 8.507059e+37 }
  0xc6   : > { %v521_v32 = vpop.eup %520 }
  0xc7   : > { %v523_v33 = vpop.eup %522  ;;  %v290_v34 = vmul.f32 %v521_v32, %v287_v30  ;;  %vm295_vm1 = vweird.f32 %v521_v32 }
  0xc8   : > { %v305_v35 = vmul.f32 %v523_v33, %v288_v31  ;;  %vm310_vm2 = vweird.f32 %v523_v33  ;;  %vm772_vm5 = vmor %vm294_vm3, %vm295_vm1 }
  0xc9   : > { %v291_v36 = vsub.f32 1.0, %v290_v34  ;;  %vm311_vm6 = vmor %vm309_vm4, %vm310_vm2 }
  0xca   : > { %v306_v37 = vsub.f32 1.0, %v305_v35 }
  0xcb   : > { %v292_v38 = vmul.f32 %v521_v32, %v291_v36 }
  0xcc   : > { %v307_v40 = vmul.f32 %v523_v33, %v306_v37 }
  0xcd   : > { %v293_v43 = vadd.f32 %v521_v32, %v292_v38 }
  0xce   : > { %v308_v44 = vadd.f32 %v523_v33, %v307_v40 }
  0xcf   : > { %v297_v49 = vsel %vm772_vm5, %v521_v32, %v293_v43 }
  0xd0   : > { %v312_v50 = vsel %vm311_vm6, %v523_v33, %v308_v44  ;;  %v302_v54 = vsel %vm299_vm9, %v301_v51, %v297_v49 }
  0xd1   : > { %v317_v52 = vsel %vm314_vm7, %v316_v48, %v312_v50 }
  0xd2   : > { %v321_v53 = vrot.slane %v317_v52, 7 }
  0xd4   : > { %v323_v55 = vsel %vm322_vm8, %v302_v54, %v321_v53 }
  0xd5   : > { %329 = vst.msk [vmem:[%s210_s17] sm:$0x3] %vm327_vm10, %v323_v55 }
  0xd6   : > { %581 = shalt.err (!%p578_p13)
}
  0xd7   : > { %452 = dma.vmem_to_hbm [thread:$0]  (%p715_p9), %s346_s7, 32, %s348_s8, %s331_s9  }
  0xd8 PF: > { %s359_s2 = sand.u32 1, %s616_s14   ;;  %p459_p0 = pnand %p434_p12, %p722_p11 }
  0xd9   : > { %s360_s23 = scalar_lea.sflag [#allocation5], %s359_s2 }
  0xda   : > { %p460_p1 = pneg %p459_p0 }
  0xdc   : > { %611 = dma.done.wait (%p460_p1), %s360_s23, 32  }
  0xdd   : > { %613 = vsyncadd (%p460_p1), %s360_s23, 4294967264  ;;  %s21_s19 = sadd.s32 1, %s636_s19   ;;  %s822_s14 = smov %s620_s15 }
  0xde   : > { %p18_p2 = scmp.ge.s32.totalorder %s21_s19, 4   ;;  %s823_s15 = smov %s624_s16 }
  0xdf   : > { %s824_s16 = smov %s720_s27  ;;  %s825_s17 = smov %s632_s18 }
  0xe0   : > { %s826_s18 = smov %s828_s21  ;;  %20 = sbr.rel (!%p18_p2) target bundleno = 9 (0x9), region = 77 }
  0xe5   :  { %366 = vsyncpa [#allocation4], 1 }
  0xe6   :  { %368 = vsyncpa [#allocation4 + $0x1], 1 }
  0xe7   :  { %369 = vsyncpa [#allocation5], 1 }
  0xe8   :  { %371 = vsyncpa [#allocation5 + $0x1], 1 }

</bundles_post_ra>
